<compile_context>
chip_gen: v7x
topology: tpu7x:2x2x1
jax: 0.10.0
libtpu: 0.0.40
codegen_flags: <defaults>
</compile_context>

<pallas_src>
import jax
import jax.numpy as jnp
from jax.experimental import pallas as pl
from jax.experimental.pallas import tpu as pltpu


def _chain_kernel(x_ref, u0_ref, wu_ref, b_ref, out_ref):
    """Fully-unrolled progressive chain; everything is resident in VMEM.

    x_ref  : (L, B, D)      bf16  per-step inputs
    u0_ref : (D, H)         bf16  input-path weight of the `initial` module
    wu_ref : (L-1, H+D, H)  bf16  fused [W_i ; U_i] weights of progressive blocks
    b_ref  : (L, 1, H)      f32   biases (row 0 = initial module bias)
    out_ref: (L, B, H)      f32   stacked collector output (row 0 = initial state)
    """
    L = x_ref.shape[0]

    # initial module: state = tanh(x0 @ U0 + b0)  (bf16 MXU pass, f32 accumulate)
    acc = jnp.dot(x_ref[0], u0_ref[...], preferred_element_type=jnp.float32) + b_ref[0]
    state_f32 = jnp.tanh(acc)
    out_ref[0] = state_f32.astype(out_ref.dtype)
    state = state_f32.astype(jnp.bfloat16)

    # progressive blocks: state = relu([state, x_i] @ [W_i ; U_i] + b_i)
    # One K = H + D matmul per step: merged state/input contraction fills the
    # 256-deep MXU on v6e/v7x in a single pass and halves result-FIFO drains.
    # The lane-axis concat of two adjacent (B,128) bf16 tiles is essentially free.
    # TODO(synk): for large L, switch this Python unroll to lax.fori_loop(unroll=True)
    # or a grid over L with a VMEM state scratch (irrelevant at L=4).
    for i in range(1, L):
        lhs = jnp.concatenate([state, x_ref[i]], axis=-1)            # (B, H+D) bf16
        acc = jnp.dot(lhs, wu_ref[i - 1], preferred_element_type=jnp.float32) + b_ref[i]
        state_f32 = jnp.maximum(acc, 0.0)
        out_ref[i] = state_f32.astype(out_ref.dtype)
        state = state_f32.astype(jnp.bfloat16)


def progressive_with_state_init(x, u, w, b):
    """x: (L, B, D), u: (L, D, H), w: (L-1, H, H), b: (L, 1, H) -> (L, B, H) f32.

    Row i of the result is the i-th element of the Python list the PyTorch
    module would return (row 0 is the state produced by `initial`).
    """
    L, B, D = x.shape
    H = u.shape[-1]
    assert u.shape == (L, D, H)
    assert w.shape == (L - 1, H, H)
    assert b.shape == (L, 1, H)

    # Argument packing (done once per call; in a real workload these weights
    # would be pre-packed).  bf16 operands -> single MXU pass per dot and half
    # the HBM->VMEM bytes; biases stay f32 for the accumulator add.
    x_bf = x.astype(jnp.bfloat16)
    u0_bf = u[0].astype(jnp.bfloat16)
    # Fuse state-path and input-path weights along the contraction dim so the
    # kernel does a single (B, H+D) @ (H+D, H) matmul per progressive step:
    #   concat([state, x_i], -1) @ concat([W_i, U_i], 0) == state@W_i + x_i@U_i
    wu_bf = jnp.concatenate([w, u[1:]], axis=1).astype(jnp.bfloat16)   # (L-1, H+D, H)
    b_f32 = b.astype(jnp.float32)

    vmem = pl.BlockSpec(memory_space=pltpu.MemorySpace.VMEM)
    return pl.pallas_call(
        _chain_kernel,
        out_shape=jax.ShapeDtypeStruct((L, B, H), jnp.float32),
        in_specs=[vmem, vmem, vmem, vmem],
        out_specs=vmem,
    )(x_bf, u0_bf, wu_bf, b_f32)


def _reference(x, u, w, b):
    """Pure-JAX f32 reference matching the PyTorch module semantics."""
    L = x.shape[0]
    state = jnp.tanh(x[0] @ u[0] + b[0])            # initial module
    outs = [state]
    for i in range(1, L):                           # progressive blocks
        state = jnp.maximum(state @ w[i - 1] + x[i] @ u[i] + b[i], 0.0)
        outs.append(state)
    return jnp.stack(outs, axis=0)


if __name__ == "__main__":
    # L list elements (1 initial input + L-1 progressive-block inputs).
    # B = 128 so each MXU push uses a full 128-row tile (review: avoid M
    # starvation); D = H = 128 keeps the lane axis fully dense.
    L, B, D, H = 4, 128, 128, 128

    key = jax.random.PRNGKey(0)
    kx, ku, kw, kb = jax.random.split(key, 4)

    x = jax.random.normal(kx, (L, B, D), dtype=jnp.float32)
    u = jax.random.normal(ku, (L, D, H), dtype=jnp.float32) * 0.1
    w = jax.random.normal(kw, (L - 1, H, H), dtype=jnp.float32) * 0.1
    b = jax.random.normal(kb, (L, 1, H), dtype=jnp.float32) * 0.1

    fn = jax.jit(progressive_with_state_init)
    out = jax.block_until_ready(fn(x, u, w, b))

    ref = _reference(x, u, w, b)
    assert out.shape == (L, B, H)
    # bf16 MXU passes (f32 accumulation) -> looser tolerance than pure f32.
    max_diff = float(jnp.max(jnp.abs(out - ref)))
    assert jnp.allclose(out, ref, atol=5e-2, rtol=5e-2), (
        "mismatch vs reference, max |diff| = %g" % max_diff)

    print("KERNEL_OK")
</pallas_src>

<mosaic_0001>
module attributes {stable_mosaic.version = 11 : i64} {
  func.func @_chain_kernel(%arg0: memref<4x128x128xbf16, #tpu.memory_space<vmem>>, %arg1: memref<128x128xbf16, #tpu.memory_space<vmem>>, %arg2: memref<3x256x128xbf16, #tpu.memory_space<vmem>>, %arg3: memref<4x1x128xf32, #tpu.memory_space<vmem>>, %arg4: memref<4x128x128xf32, #tpu.memory_space<vmem>>) attributes {dimension_semantics = [], scalar_prefetch = 0 : i64, scratch_operands = 0 : i64, tpu.core_type = #tpu.core_type<tc>} {
    %c0 = arith.constant 0 : index
    %c0_0 = arith.constant 0 : index
    %c0_1 = arith.constant 0 : index
    %0 = vector.load %arg0[%c0, %c0_0, %c0_1] : memref<4x128x128xbf16, #tpu.memory_space<vmem>>, vector<1x128x128xbf16>
    %1 = vector.shape_cast %0 : vector<1x128x128xbf16> to vector<128x128xbf16>
    %c0_2 = arith.constant 0 : index
    %c0_3 = arith.constant 0 : index
    %2 = vector.load %arg1[%c0_2, %c0_3] : memref<128x128xbf16, #tpu.memory_space<vmem>>, vector<128x128xbf16>
    %cst = arith.constant dense<0.000000e+00> : vector<128x128xf32>
    %3 = tpu.matmul %1, %2, %cst {dimension_numbers = #tpu.dot_dimension_numbers<[1], [0], [0], [1], [0, 0, 1, 1], [], []>} : vector<128x128xbf16>, vector<128x128xbf16>, vector<128x128xf32> -> vector<128x128xf32>
    %c0_4 = arith.constant 0 : index
    %c0_5 = arith.constant 0 : index
    %c0_6 = arith.constant 0 : index
    %4 = vector.load %arg3[%c0_4, %c0_5, %c0_6] : memref<4x1x128xf32, #tpu.memory_space<vmem>>, vector<1x1x128xf32>
    %5 = vector.shape_cast %4 : vector<1x1x128xf32> to vector<1x128xf32>
    %6 = vector.broadcast %5 : vector<1x128xf32> to vector<128x128xf32>
    %7 = arith.addf %3, %6 : vector<128x128xf32>
    %8 = math.tanh %7 : vector<128x128xf32>
    %c0_7 = arith.constant 0 : index
    %c0_8 = arith.constant 0 : index
    %c0_9 = arith.constant 0 : index
    %9 = vector.load %arg4[%c0_7, %c0_8, %c0_9] : memref<4x128x128xf32, #tpu.memory_space<vmem>>, vector<1x128x128xf32>
    %10 = vector.shape_cast %9 : vector<1x128x128xf32> to vector<128x128xf32>
    %11 = vector.shape_cast %8 : vector<128x128xf32> to vector<1x128x128xf32>
    tpu.vector_store %arg4[%c0_7, %c0_8, %c0_9], %11 {strides = array<i32>} : memref<4x128x128xf32, #tpu.memory_space<vmem>>, vector<1x128x128xf32>,
    %12 = arith.truncf %8 : vector<128x128xf32> to vector<128x128xbf16>
    %c1 = arith.constant 1 : index
    %c0_10 = arith.constant 0 : index
    %c0_11 = arith.constant 0 : index
    %13 = vector.load %arg0[%c1, %c0_10, %c0_11] : memref<4x128x128xbf16, #tpu.memory_space<vmem>>, vector<1x128x128xbf16>
    %14 = vector.shape_cast %13 : vector<1x128x128xbf16> to vector<128x128xbf16>
    %15 = tpu.concatenate %12, %14 in 1 : vector<128x128xbf16>, vector<128x128xbf16> -> vector<128x256xbf16>
    %c0_12 = arith.constant 0 : index
    %c0_13 = arith.constant 0 : index
    %c0_14 = arith.constant 0 : index
    %16 = vector.load %arg2[%c0_12, %c0_13, %c0_14] : memref<3x256x128xbf16, #tpu.memory_space<vmem>>, vector<1x256x128xbf16>
    %17 = vector.shape_cast %16 : vector<1x256x128xbf16> to vector<256x128xbf16>
    %cst_15 = arith.constant dense<0.000000e+00> : vector<128x128xf32>
    %18 = tpu.matmul %15, %17, %cst_15 {dimension_numbers = #tpu.dot_dimension_numbers<[1], [0], [0], [1], [0, 0, 1, 1], [], []>} : vector<128x256xbf16>, vector<256x128xbf16>, vector<128x128xf32> -> vector<128x128xf32>
    %c1_16 = arith.constant 1 : index
    %c0_17 = arith.constant 0 : index
    %c0_18 = arith.constant 0 : index
    %19 = vector.load %arg3[%c1_16, %c0_17, %c0_18] : memref<4x1x128xf32, #tpu.memory_space<vmem>>, vector<1x1x128xf32>
    %20 = vector.shape_cast %19 : vector<1x1x128xf32> to vector<1x128xf32>
    %21 = vector.broadcast %20 : vector<1x128xf32> to vector<128x128xf32>
    %22 = arith.addf %18, %21 : vector<128x128xf32>
    %cst_19 = arith.constant 0.000000e+00 : f32
    %23 = vector.broadcast %cst_19 : f32 to vector<128x128xf32>
    %24 = arith.maximumf %22, %23 : vector<128x128xf32>
    %c1_20 = arith.constant 1 : index
    %c0_21 = arith.constant 0 : index
    %c0_22 = arith.constant 0 : index
    %25 = vector.load %arg4[%c1_20, %c0_21, %c0_22] : memref<4x128x128xf32, #tpu.memory_space<vmem>>, vector<1x128x128xf32>
    %26 = vector.shape_cast %25 : vector<1x128x128xf32> to vector<128x128xf32>
    %27 = vector.shape_cast %24 : vector<128x128xf32> to vector<1x128x128xf32>
    tpu.vector_store %arg4[%c1_20, %c0_21, %c0_22], %27 {strides = array<i32>} : memref<4x128x128xf32, #tpu.memory_space<vmem>>, vector<1x128x128xf32>,
    %28 = arith.truncf %24 : vector<128x128xf32> to vector<128x128xbf16>
    %c2 = arith.constant 2 : index
    %c0_23 = arith.constant 0 : index
    %c0_24 = arith.constant 0 : index
    %29 = vector.load %arg0[%c2, %c0_23, %c0_24] : memref<4x128x128xbf16, #tpu.memory_space<vmem>>, vector<1x128x128xbf16>
    %30 = vector.shape_cast %29 : vector<1x128x128xbf16> to vector<128x128xbf16>
    %31 = tpu.concatenate %28, %30 in 1 : vector<128x128xbf16>, vector<128x128xbf16> -> vector<128x256xbf16>
    %c1_25 = arith.constant 1 : index
    %c0_26 = arith.constant 0 : index
    %c0_27 = arith.constant 0 : index
    %32 = vector.load %arg2[%c1_25, %c0_26, %c0_27] : memref<3x256x128xbf16, #tpu.memory_space<vmem>>, vector<1x256x128xbf16>
    %33 = vector.shape_cast %32 : vector<1x256x128xbf16> to vector<256x128xbf16>
    %cst_28 = arith.constant dense<0.000000e+00> : vector<128x128xf32>
    %34 = tpu.matmul %31, %33, %cst_28 {dimension_numbers = #tpu.dot_dimension_numbers<[1], [0], [0], [1], [0, 0, 1, 1], [], []>} : vector<128x256xbf16>, vector<256x128xbf16>, vector<128x128xf32> -> vector<128x128xf32>
    %c2_29 = arith.constant 2 : index
    %c0_30 = arith.constant 0 : index
    %c0_31 = arith.constant 0 : index
    %35 = vector.load %arg3[%c2_29, %c0_30, %c0_31] : memref<4x1x128xf32, #tpu.memory_space<vmem>>, vector<1x1x128xf32>
    %36 = vector.shape_cast %35 : vector<1x1x128xf32> to vector<1x128xf32>
    %37 = vector.broadcast %36 : vector<1x128xf32> to vector<128x128xf32>
    %38 = arith.addf %34, %37 : vector<128x128xf32>
    %cst_32 = arith.constant 0.000000e+00 : f32
    %39 = vector.broadcast %cst_32 : f32 to vector<128x128xf32>
    %40 = arith.maximumf %38, %39 : vector<128x128xf32>
    %c2_33 = arith.constant 2 : index
    %c0_34 = arith.constant 0 : index
    %c0_35 = arith.constant 0 : index
    %41 = vector.load %arg4[%c2_33, %c0_34, %c0_35] : memref<4x128x128xf32, #tpu.memory_space<vmem>>, vector<1x128x128xf32>
    %42 = vector.shape_cast %41 : vector<1x128x128xf32> to vector<128x128xf32>
    %43 = vector.shape_cast %40 : vector<128x128xf32> to vector<1x128x128xf32>
    tpu.vector_store %arg4[%c2_33, %c0_34, %c0_35], %43 {strides = array<i32>} : memref<4x128x128xf32, #tpu.memory_space<vmem>>, vector<1x128x128xf32>,
    %44 = arith.truncf %40 : vector<128x128xf32> to vector<128x128xbf16>
    %c3 = arith.constant 3 : index
    %c0_36 = arith.constant 0 : index
    %c0_37 = arith.constant 0 : index
    %45 = vector.load %arg0[%c3, %c0_36, %c0_37] : memref<4x128x128xbf16, #tpu.memory_space<vmem>>, vector<1x128x128xbf16>
    %46 = vector.shape_cast %45 : vector<1x128x128xbf16> to vector<128x128xbf16>
    %47 = tpu.concatenate %44, %46 in 1 : vector<128x128xbf16>, vector<128x128xbf16> -> vector<128x256xbf16>
    %c2_38 = arith.constant 2 : index
    %c0_39 = arith.constant 0 : index
    %c0_40 = arith.constant 0 : index
    %48 = vector.load %arg2[%c2_38, %c0_39, %c0_40] : memref<3x256x128xbf16, #tpu.memory_space<vmem>>, vector<1x256x128xbf16>
    %49 = vector.shape_cast %48 : vector<1x256x128xbf16> to vector<256x128xbf16>
    %cst_41 = arith.constant dense<0.000000e+00> : vector<128x128xf32>
    %50 = tpu.matmul %47, %49, %cst_41 {dimension_numbers = #tpu.dot_dimension_numbers<[1], [0], [0], [1], [0, 0, 1, 1], [], []>} : vector<128x256xbf16>, vector<256x128xbf16>, vector<128x128xf32> -> vector<128x128xf32>
    %c3_42 = arith.constant 3 : index
    %c0_43 = arith.constant 0 : index
    %c0_44 = arith.constant 0 : index
    %51 = vector.load %arg3[%c3_42, %c0_43, %c0_44] : memref<4x1x128xf32, #tpu.memory_space<vmem>>, vector<1x1x128xf32>
    %52 = vector.shape_cast %51 : vector<1x1x128xf32> to vector<1x128xf32>
    %53 = vector.broadcast %52 : vector<1x128xf32> to vector<128x128xf32>
    %54 = arith.addf %50, %53 : vector<128x128xf32>
    %cst_45 = arith.constant 0.000000e+00 : f32
    %55 = vector.broadcast %cst_45 : f32 to vector<128x128xf32>
    %56 = arith.maximumf %54, %55 : vector<128x128xf32>
    %c3_46 = arith.constant 3 : index
    %c0_47 = arith.constant 0 : index
    %c0_48 = arith.constant 0 : index
    %57 = vector.load %arg4[%c3_46, %c0_47, %c0_48] : memref<4x128x128xf32, #tpu.memory_space<vmem>>, vector<1x128x128xf32>
    %58 = vector.shape_cast %57 : vector<1x128x128xf32> to vector<128x128xf32>
    %59 = vector.shape_cast %56 : vector<128x128xf32> to vector<1x128x128xf32>
    tpu.vector_store %arg4[%c3_46, %c0_47, %c0_48], %59 {strides = array<i32>} : memref<4x128x128xf32, #tpu.memory_space<vmem>>, vector<1x128x128xf32>,
    return
  }
}

</mosaic_0001>

<bundles_post_ra>
// kernel: progressive_with_state_init.1
= control target key start
LH: loop header
LB: loop body
LE: loop exit
PB: predicated region body
PF: predicated region fallthrough
CT: control target
= control target key end

     0   :  { %s2324_s0 = inlined_call_operand.vmem [shape: bf16[4,128,128], index: 0, kind: input, shape index: {}]   ;;  %s2325_s1 = inlined_call_operand.vmem [shape: bf16[128,128], index: 1, kind: input, shape index: {}]   ;;  %s2326_s2 = inlined_call_operand.vmem [shape: bf16[3,256,128], index: 2, kind: input, shape index: {}]   ;;  %s2327_s3 = inlined_call_operand.vmem [shape: f32[4,1,128], index: 3, kind: input, shape index: {}]   ;;  %s2328_s4 = inlined_call_operand.hbm [shape: f32[4,128,128], index: 4, kind: output, shape index: {}]  }
   0x1   :  { %v1784_v0 = vld [vmem:[%s2325_s1] sm:$0xff]   ;;  %v1785_v1 = vld [vmem:[%s2325_s1 + $0x8] sm:$0xff]   ;;  %v1786_v2 = vld [vmem:[%s2325_s1 + $0x10] sm:$0xff]  }
   0x2   :  { %1733 = vmatprep.subr.bf16.mxu0 %v1784_v0  ;;  %v1787_v3 = vld [vmem:[%s2325_s1 + $0x18] sm:$0xff]   ;;  %v1792_v4 = vld [vmem:[%s2324_s0] sm:$0xff]   ;;  %v1789_v6 = vld [vmem:[%s2325_s1 + $0x28] sm:$0xff]  }
   0x3   :  { %1734 = vmatpush3.bf16.msra.mxu0 %v1784_v0  ;;  %1749 = vmatprep.mubr.bf16.mxu0 %v1792_v4  ;;  %v1788_v5 = vld [vmem:[%s2325_s1 + $0x20] sm:$0xff]   ;;  %v1790_v9 = vld [vmem:[%s2325_s1 + $0x30] sm:$0xff]   ;;  %v1802_v10 = vld [vmem:[%s2326_s2 + $0x48] sm:$0xff]  }
   0x4   :  { %1735 = vmatprep.subr.bf16.mxu0 %v1785_v1  ;;  %v1800_v7 = vld [vmem:[%s2326_s2 + $0x40] sm:$0xff]   ;;  %v1803_v11 = vld [vmem:[%s2326_s2 + $0x8] sm:$0xff]   ;;  %v1804_v12 = vld [vmem:[%s2326_s2 + $0x50] sm:$0xff]  }
   0x5   :  { %v1801_v8 = vld [vmem:[%s2326_s2] sm:$0xff]   ;;  %1541 = vmatprep.subr.bf16.mxu1 %v1800_v7  ;;  %v1805_v13 = vld [vmem:[%s2326_s2 + $0x10] sm:$0xff]   ;;  %v1791_v14 = vld [vmem:[%s2325_s1 + $0x38] sm:$0xff]  }
   0x6   :  { %1542 = vmatpush3.bf16.msra.mxu1 %v1801_v8  ;;  %v1806_v15 = vld [vmem:[%s2326_s2 + $0x58] sm:$0xff]   ;;  %v1793_v16 = vld [vmem:[%s2324_s0 + $0x8] sm:$0xff]   ;;  %v1794_v17 = vld [vmem:[%s2324_s0 + $0x10] sm:$0xff]  }
   0x7   :  { %1736 = vmatpush3.bf16.msra.mxu0 %v1785_v1  ;;  %1543 = vmatprep.subr.bf16.mxu1 %v1802_v10  ;;  %v1795_v18 = vld [vmem:[%s2324_s0 + $0x18] sm:$0xff]   ;;  %v1796_v19 = vld [vmem:[%s2324_s0 + $0x20] sm:$0xff]   ;;  %v1797_v20 = vld [vmem:[%s2324_s0 + $0x28] sm:$0xff]  }
   0x8   :  { %1737 = vmatprep.subr.bf16.mxu0 %v1786_v2  ;;  %v1798_v21 = vld [vmem:[%s2324_s0 + $0x30] sm:$0xff]   ;;  %v1799_v22 = vld [vmem:[%s2324_s0 + $0x38] sm:$0xff]  }
   0xa   :  { %1544 = vmatpush3.bf16.msra.mxu1 %v1803_v11 }
   0xb   :  { %1738 = vmatpush3.bf16.msra.mxu0 %v1786_v2  ;;  %1545 = vmatprep.subr.bf16.mxu1 %v1804_v12 }
   0xc   :  { %1739 = vmatprep.subr.bf16.mxu0 %v1787_v3 }
   0xe   :  { %1546 = vmatpush3.bf16.msra.mxu1 %v1805_v13 }
   0xf   :  { %1740 = vmatpush3.bf16.msra.mxu0 %v1787_v3  ;;  %1547 = vmatprep.subr.bf16.mxu1 %v1806_v15 }
  0x10   :  { %1741 = vmatprep.subr.bf16.mxu0 %v1788_v5 }
  0x13   :  { %1742 = vmatpush3.bf16.msra.mxu0 %v1788_v5 }
  0x14   :  { %1743 = vmatprep.subr.bf16.mxu0 %v1789_v6 }
  0x17   :  { %1744 = vmatpush3.bf16.msra.mxu0 %v1789_v6 }
  0x18   :  { %1745 = vmatprep.subr.bf16.mxu0 %v1790_v9 }
  0x1b   :  { %1746 = vmatpush3.bf16.msra.mxu0 %v1790_v9 }
  0x1c   :  { %1747 = vmatprep.subr.bf16.mxu0 %v1791_v14 }
  0x1f   :  { %1748 = vmatpush3.bf16.msra.mxu0 %v1791_v14 }
  0x22   :  { %1750 = vmatmul.mubr.bf16.vlgmr.msra.gmra.mrb[0].mxu0 %v1793_v16 }
  0x23   :  { %1753 = vmatprep.mubr.bf16.mxu0 %v1794_v17 }
  0x2a   :  { %1754 = vmatmul.mubr.bf16.gmra.mrb[4].mxu0 %v1795_v18 }
  0x2b   :  { %1757 = vmatprep.mubr.bf16.mxu0 %v1796_v19 }
  0x32   :  { %1758 = vmatmul.mubr.bf16.gmra.mrb[8].mxu0 %v1797_v20 }
  0x33   :  { %1761 = vmatprep.mubr.bf16.mxu0 %v1798_v21 }
  0x3a   :  { %1762 = vmatmul.mubr.bf16.gmra.mrb[12].mxu0 %v1799_v22 }
  0x3b   :  { %9 = vsyncpa [#allocation3], 0  ;;  %v1807_v23 = vld [vmem:[%s2326_s2 + $0x18] sm:$0xff]   ;;  %v1808_v24 = vld [vmem:[%s2326_s2 + $0x60] sm:$0xff]  }
  0x3c   :  { %1548 = vmatpush3.bf16.msra.mxu1 %v1807_v23  ;;  %v1809_v25 = vld [vmem:[%s2326_s2 + $0x20] sm:$0xff]   ;;  %v1810_v26 = vld [vmem:[%s2326_s2 + $0x68] sm:$0xff]   ;;  %v1812_v28 = vld [vmem:[%s2326_s2 + $0x70] sm:$0xff]  }
  0x3d   :  { %1549 = vmatprep.subr.bf16.mxu1 %v1808_v24  ;;  %v1811_v27 = vld [vmem:[%s2326_s2 + $0x28] sm:$0xff]   ;;  %v1813_v29 = vld [vmem:[%s2326_s2 + $0x30] sm:$0xff]   ;;  %v1814_v30 = vld [vmem:[%s2326_s2 + $0x78] sm:$0xff]  }
  0x3e   :  { %v1815_v31 = vld [vmem:[%s2326_s2 + $0x38] sm:$0xff]   ;;  %v1816_v32 = vld [vmem:[%s2324_s0 + $0x40] sm:$0xff]   ;;  %v1826_v35 = vld [vmem:[%s2326_s2 + $0xc8] sm:$0xff]  }
  0x3f   :  { %524 = vmatprep.mubr.bf16.mxu1 %v1816_v32  ;;  %v1824_v33 = vld [vmem:[%s2326_s2 + $0xc0] sm:$0xff]   ;;  %v1827_v36 = vld [vmem:[%s2326_s2 + $0x88] sm:$0xff]   ;;  %v1828_v37 = vld [vmem:[%s2326_s2 + $0xd0] sm:$0xff]  }
  0x40   :  { %1550 = vmatpush3.bf16.msra.mxu1 %v1809_v25  ;;  %v1825_v34 = vld [vmem:[%s2326_s2 + $0x80] sm:$0xff]   ;;  %1605 = vmatprep.subr.bf16.mxu0 %v1824_v33  ;;  %v1829_v38 = vld [vmem:[%s2326_s2 + $0x90] sm:$0xff]   ;;  %v1830_v39 = vld [vmem:[%s2326_s2 + $0xd8] sm:$0xff]  }
  0x41   :  { %1551 = vmatprep.subr.bf16.mxu1 %v1810_v26  ;;  %1606 = vmatpush3.bf16.msra.mxu0 %v1825_v34  ;;  %v1831_v40 = vld [vmem:[%s2326_s2 + $0x98] sm:$0xff]   ;;  %v1832_v41 = vld [vmem:[%s2326_s2 + $0xe0] sm:$0xff]   ;;  %v1834_v43 = vld [vmem:[%s2326_s2 + $0xe8] sm:$0xff]  }
  0x42   :  { %1607 = vmatprep.subr.bf16.mxu0 %v1826_v35  ;;  %v1833_v42 = vld [vmem:[%s2326_s2 + $0xa0] sm:$0xff]   ;;  %v1817_v1 = vld [vmem:[%s2324_s0 + $0x48] sm:$0xff]   ;;  %v1818_v16 = vld [vmem:[%s2324_s0 + $0x50] sm:$0xff]  }
  0x43   :  { %v2091_v44 = vld [vmem:[%s2327_s3] ss:$0 sm:$0xff] }
  0x44   :  { %1552 = vmatpush3.bf16.msra.mxu1 %v1811_v27 }
  0x45   :  { %1553 = vmatprep.subr.bf16.mxu1 %v1812_v28  ;;  %1608 = vmatpush3.bf16.msra.mxu0 %v1827_v36 }
  0x46   :  { %1609 = vmatprep.subr.bf16.mxu0 %v1828_v37 }
  0x48   :  { %1554 = vmatpush3.bf16.msra.mxu1 %v1813_v29 }
  0x49   :  { %1555 = vmatprep.subr.bf16.mxu1 %v1814_v30  ;;  %1610 = vmatpush3.bf16.msra.mxu0 %v1829_v38  ;;  %v1820_v38 = vld [vmem:[%s2324_s0 + $0x60] sm:$0xff]  }
  0x4a   :  { %1611 = vmatprep.subr.bf16.mxu0 %v1830_v39 }
  0x4c   :  { %1556 = vmatpush3.bf16.msra.mxu1 %v1815_v31  ;;  %v1819_v31 = vld [vmem:[%s2324_s0 + $0x58] sm:$0xff]  }
  0x4d   :  { %1612 = vmatpush3.bf16.msra.mxu0 %v1831_v40 }
  0x4e   :  { %1613 = vmatprep.subr.bf16.mxu0 %v1832_v41  ;;  %v1821_v41 = vld [vmem:[%s2324_s0 + $0x68] sm:$0xff]  }
  0x51   :  { %1614 = vmatpush3.bf16.msra.mxu0 %v1833_v42  ;;  %v1822_v42 = vld [vmem:[%s2324_s0 + $0x70] sm:$0xff]  }
  0x52   :  { %1615 = vmatprep.subr.bf16.mxu0 %v1834_v43  ;;  %v1823_v43 = vld [vmem:[%s2324_s0 + $0x78] sm:$0xff]  }
  0xf5   :  { %v1751_v45 = vpop.f32.mrb[0].mxu0 }
  0xf6   :  { %v197_v46 = vadd.f32 %v1751_v45, %v2091_v44  ;;  %v188_v47 = vpop.f32.mrb[1].mxu0  ;;  %v1836_v45 = vld [vmem:[%s2326_s2 + $0xf0] sm:$0xff]  }
  0xf7   :  { %v189_v48 = vadd.f32 %v2091_v44, %v188_v47  ;;  %v1752_v49 = vpop.f32.mrb[2].mxu0  ;;  %v1838_v47 = vld [vmem:[%s2326_s2 + $0xf8] sm:$0xff]  }
  0xf8   :  { %1872 = vtanh.f32 %v197_v46  ;;  %v200_v50 = vadd.f32 %v1752_v49, %v2091_v44  ;;  %v191_v51 = vpop.f32.mrb[3].mxu0  ;;  %v1837_v46 = vld [vmem:[%s2326_s2 + $0xb0] sm:$0xff]   ;;  %v1840_v49 = vld [vmem:[%s2324_s0 + $0x80] sm:$0xff]  }
  0xf9   :  { %1874 = vtanh.f32 %v189_v48  ;;  %v192_v52 = vadd.f32 %v2091_v44, %v191_v51  ;;  %v1839_v48 = vld [vmem:[%s2326_s2 + $0xb8] sm:$0xff]   ;;  %864 = vmatprep.mubr.bf16.mxu0 %v1840_v49  ;;  %v1849_v51 = vld [vmem:[%s2326_s2 + $0x100] sm:$0xff]  }
  0xfa   :  { %1876 = vtanh.f32 %v200_v50  ;;  %v1848_v50 = vld [vmem:[%s2326_s2 + $0x140] sm:$0xff]  }
  0xfb   :  { %1878 = vtanh.f32 %v192_v52  ;;  %1765 = vmatprep.subr.bf16.mxu1 %v1848_v50  ;;  %v1850_v52 = vld [vmem:[%s2326_s2 + $0x148] sm:$0xff]  }
  0xfd   :  { %v1755_v53 = vpop.f32.mrb[4].mxu0 }
  0xfe   :  { %v213_v54 = vadd.f32 %v1755_v53, %v2091_v44  ;;  %v204_v55 = vpop.f32.mrb[5].mxu0  ;;  %v1851_v53 = vld [vmem:[%s2326_s2 + $0x108] sm:$0xff]  }
  0xff   :  { %v205_v56 = vadd.f32 %v2091_v44, %v204_v55  ;;  %v1756_v57 = vpop.f32.mrb[6].mxu0  ;;  %v1853_v55 = vld [vmem:[%s2326_s2 + $0x110] sm:$0xff]  }
 0x100   :  { %1880 = vtanh.f32 %v213_v54  ;;  %v216_v58 = vadd.f32 %v1756_v57, %v2091_v44  ;;  %v207_v59 = vpop.f32.mrb[7].mxu0  ;;  %v1852_v54 = vld [vmem:[%s2326_s2 + $0x150] sm:$0xff]   ;;  %v1855_v57 = vld [vmem:[%s2326_s2 + $0x118] sm:$0xff]  }
 0x101   :  { %1882 = vtanh.f32 %v205_v56  ;;  %v208_v60 = vadd.f32 %v2091_v44, %v207_v59  ;;  %v1854_v56 = vld [vmem:[%s2326_s2 + $0x158] sm:$0xff]   ;;  %v2181_v59 = vld [vmem:[%s2326_s2 + $0x120] sm:$0xff]  }
 0x102   :  { %v1873_v61 = vpop.eup %1872  ;;  %1884 = vtanh.f32 %v216_v58  ;;  %v2175_v58 = vld [vmem:[%s2326_s2 + $0x160] sm:$0xff]  }
 0x103   :  { %v1875_v62 = vpop.eup %1874  ;;  %269 = vst [vmem:[#allocation2 + $0x10] sm:$0xff] %v1873_v61  ;;  %1886 = vtanh.f32 %v208_v60 }
 0x104   :  { %v1877_v63 = vpop.eup %1876  ;;  %267 = vst [vmem:[#allocation2] sm:$0xff] %v1875_v62 }
 0x105   :  { %v1879_v0 = vpop.eup %1878  ;;  %270 = vst [vmem:[#allocation2 + $0x18] sm:$0xff] %v1877_v63  ;;  %v284_v2 = vpack.c.bf16 %v1877_v63, %v1873_v61  ;;  %v1759_v3 = vpop.f32.mrb[8].mxu0  ;;  %v2187_v61 = vld [vmem:[%s2327_s3 + $0x1] ss:$0 sm:$0xff] }
 0x106   :  { %268 = vst [vmem:[#allocation2 + $0x8] sm:$0xff] %v1879_v0  ;;  %v283_v4 = vpack.c.bf16 %v1879_v0, %v1875_v62  ;;  %v229_v5 = vadd.f32 %v1759_v3, %v2091_v44  ;;  %v220_v6 = vpop.f32.mrb[9].mxu0 }
 0x107   :  { %v221_v7 = vadd.f32 %v2091_v44, %v220_v6  ;;  %v1760_v8 = vpop.f32.mrb[10].mxu0 }
 0x108   :  { %525 = vmatmul.mubr.bf16.vlgmr.msra.gmra.mrb[0].mxu1 %v283_v4  ;;  %1888 = vtanh.f32 %v229_v5  ;;  %v232_v9 = vadd.f32 %v1760_v8, %v2091_v44  ;;  %v223_v10 = vpop.f32.mrb[11].mxu0 }
 0x109   :  { %532 = vmatprep.mubr.bf16.mxu1 %v1817_v1  ;;  %1890 = vtanh.f32 %v221_v7  ;;  %v224_v11 = vadd.f32 %v2091_v44, %v223_v10  ;;  %1773 = vmatpush3.bf16.msra.mxu1 %v1849_v51 }
 0x10a   :  { %v1881_v12 = vpop.eup %1880  ;;  %1892 = vtanh.f32 %v232_v9  ;;  %1766 = vmatprep.subr.bf16.mxu1 %v1850_v52  ;;  %v1841_v9 = vld [vmem:[%s2324_s0 + $0x88] sm:$0xff]  }
 0x10b   :  { %v1883_v13 = vpop.eup %1882  ;;  %273 = vst [vmem:[#allocation2 + $0x30] sm:$0xff] %v1881_v12  ;;  %1894 = vtanh.f32 %v224_v11 }
 0x10c   :  { %v1885_v14 = vpop.eup %1884  ;;  %271 = vst [vmem:[#allocation2 + $0x20] sm:$0xff] %v1883_v13 }
 0x10d   :  { %v1887_v15 = vpop.eup %1886  ;;  %274 = vst [vmem:[#allocation2 + $0x38] sm:$0xff] %v1885_v14  ;;  %v286_v17 = vpack.c.bf16 %v1885_v14, %v1881_v12  ;;  %v1763_v18 = vpop.f32.mrb[12].mxu0  ;;  %1774 = vmatpush3.bf16.msra.mxu1 %v1851_v53 }
 0x10e   :  { %272 = vst [vmem:[#allocation2 + $0x28] sm:$0xff] %v1887_v15  ;;  %v285_v19 = vpack.c.bf16 %v1887_v15, %v1883_v13  ;;  %v245_v20 = vadd.f32 %v1763_v18, %v2091_v44  ;;  %v236_v21 = vpop.f32.mrb[13].mxu0  ;;  %1767 = vmatprep.subr.bf16.mxu1 %v1852_v54 }
 0x10f   :  { %v237_v22 = vadd.f32 %v2091_v44, %v236_v21  ;;  %v1764_v23 = vpop.f32.mrb[14].mxu0  ;;  %v1842_v21 = vld [vmem:[%s2324_s0 + $0x90] sm:$0xff]  }
 0x110   :  { %533 = vmatmul.mubr.bf16.gmra.mrb[4].mxu1 %v284_v2  ;;  %1896 = vtanh.f32 %v245_v20  ;;  %v248_v24 = vadd.f32 %v1764_v23, %v2091_v44  ;;  %v239_v25 = vpop.f32.mrb[15].mxu0 }
 0x111   :  { %540 = vmatprep.mubr.bf16.mxu1 %v1818_v16  ;;  %1898 = vtanh.f32 %v237_v22  ;;  %v240_v26 = vadd.f32 %v2091_v44, %v239_v25  ;;  %v1835_v44 = vld [vmem:[%s2326_s2 + $0xa8] sm:$0xff]   ;;  %1775 = vmatpush3.bf16.msra.mxu1 %v1853_v55 }
 0x112   :  { %v1889_v27 = vpop.eup %1888  ;;  %1900 = vtanh.f32 %v248_v24  ;;  %1616 = vmatpush3.bf16.msra.mxu0 %v1835_v44  ;;  %1768 = vmatprep.subr.bf16.mxu1 %v1854_v56 }
 0x113   :  { %v1891_v28 = vpop.eup %1890  ;;  %277 = vst [vmem:[#allocation2 + $0x50] sm:$0xff] %v1889_v27  ;;  %1902 = vtanh.f32 %v240_v26  ;;  %1617 = vmatprep.subr.bf16.mxu0 %v1836_v45  ;;  %v1844_v45 = vld [vmem:[%s2324_s0 + $0xa0] sm:$0xff]  }
 0x114   :  { %v1893_v29 = vpop.eup %1892  ;;  %275 = vst [vmem:[#allocation2 + $0x40] sm:$0xff] %v1891_v28 }
 0x115   :  { %v1895_v30 = vpop.eup %1894  ;;  %278 = vst [vmem:[#allocation2 + $0x58] sm:$0xff] %v1893_v29  ;;  %v288_v32 = vpack.c.bf16 %v1893_v29, %v1889_v27  ;;  %1776 = vmatpush3.bf16.msra.mxu1 %v1855_v57 }
 0x116   :  { %276 = vst [vmem:[#allocation2 + $0x48] sm:$0xff] %v1895_v30  ;;  %v287_v33 = vpack.c.bf16 %v1895_v30, %v1891_v28  ;;  %1618 = vmatpush3.bf16.msra.mxu0 %v1837_v46  ;;  %1769 = vmatprep.subr.bf16.mxu1 %v2175_v58 }
 0x117   :  { %1619 = vmatprep.subr.bf16.mxu0 %v1838_v47 }
 0x118   :  { %541 = vmatmul.mubr.bf16.gmra.mrb[8].mxu1 %v285_v19 }
 0x119   :  { %548 = vmatprep.mubr.bf16.mxu1 %v1819_v31  ;;  %1777 = vmatpush3.bf16.msra.mxu1 %v2181_v59 }
 0x11a   :  { %v1897_v34 = vpop.eup %1896  ;;  %1620 = vmatpush3.bf16.msra.mxu0 %v1839_v48 }
 0x11b   :  { %v1899_v35 = vpop.eup %1898  ;;  %281 = vst [vmem:[#allocation2 + $0x70] sm:$0xff] %v1897_v34  ;;  %1669 = vmatprep.subr.bf16.mxu0 %v1848_v50 }
 0x11c   :  { %v1901_v36 = vpop.eup %1900  ;;  %279 = vst [vmem:[#allocation2 + $0x60] sm:$0xff] %v1899_v35 }
 0x11d   :  { %v1903_v37 = vpop.eup %1902  ;;  %282 = vst [vmem:[#allocation2 + $0x78] sm:$0xff] %v1901_v36  ;;  %v290_v39 = vpack.c.bf16 %v1901_v36, %v1897_v34 }
 0x11e   :  { %280 = vst [vmem:[#allocation2 + $0x68] sm:$0xff] %v1903_v37  ;;  %v289_v40 = vpack.c.bf16 %v1903_v37, %v1899_v35 }
 0x120   :  { %549 = vmatmul.mubr.bf16.gmra.mrb[12].mxu1 %v286_v17 }
 0x121   :  { %556 = vmatprep.mubr.bf16.mxu1 %v1820_v38 }
 0x128   :  { %557 = vmatmul.mubr.bf16.gmra.mrb[16].mxu1 %v287_v33  ;;  %v1843_v33 = vld [vmem:[%s2324_s0 + $0x98] sm:$0xff]  }
 0x129   :  { %564 = vmatprep.mubr.bf16.mxu1 %v1821_v41 }
 0x130   :  { %565 = vmatmul.mubr.bf16.gmra.mrb[20].mxu1 %v288_v32 }
 0x131   :  { %572 = vmatprep.mubr.bf16.mxu1 %v1822_v42 }
 0x138   :  { %573 = vmatmul.mubr.bf16.gmra.mrb[24].mxu1 %v289_v40 }
 0x139   :  { %580 = vmatprep.mubr.bf16.mxu1 %v1823_v43 }
 0x140   :  { %581 = vmatmul.mubr.bf16.gmra.mrb[28].mxu1 %v290_v39 }
 0x1db   :  { %v1557_v60 = vpop.f32.mrb[0].mxu1 }
 0x1dc   :  { %v1558_v62 = vpop.f32.mrb[1].mxu1 }
 0x1dd   :  { %v1559_v63 = vadd.f32 %v1558_v62, %v1557_v60  ;;  %v1560_v0 = vpop.f32.mrb[2].mxu1 }
 0x1de   :  { %v1561_v1 = vpop.f32.mrb[3].mxu1 }
 0x1df   :  { %v527_v2 = vadd.f32 %v1559_v63, %v2187_v61  ;;  %v1562_v3 = vadd.f32 %v1561_v1, %v1560_v0 }
 0x1e1   :  { %v589_v4 = vmax.f32 %v527_v2, 0.0  ;;  %v530_v5 = vadd.f32 %v1562_v3, %v2187_v61 }
 0x1e3   :  { %606 = vst [vmem:[#allocation2 + $0x80] sm:$0xff] %v589_v4  ;;  %v590_v6 = vmax.f32 %v530_v5, 0.0  ;;  %v1563_v7 = vpop.f32.mrb[4].mxu1 }
 0x1e4   :  { %v1564_v8 = vpop.f32.mrb[5].mxu1 }
 0x1e5   :  { %607 = vst [vmem:[#allocation2 + $0x88] sm:$0xff] %v590_v6  ;;  %v622_v10 = vpack.c.bf16 %v590_v6, %v589_v4  ;;  %v1565_v11 = vadd.f32 %v1564_v8, %v1563_v7  ;;  %v1566_v12 = vpop.f32.mrb[6].mxu1  ;;  %v1846_v6 = vld [vmem:[%s2324_s0 + $0xb0] sm:$0xff]  }
 0x1e6   :  { %v1567_v13 = vpop.f32.mrb[7].mxu1 }
 0x1e7   :  { %v535_v14 = vadd.f32 %v1565_v11, %v2187_v61  ;;  %v1568_v15 = vadd.f32 %v1567_v13, %v1566_v12  ;;  %865 = vmatmul.mubr.bf16.vlgmr.msra.gmra.mrb[16].mxu0 %v622_v10 }
 0x1e8   :  { %872 = vmatprep.mubr.bf16.mxu0 %v1841_v9  ;;  %1670 = vmatpush3.bf16.msra.mxu0 %v1849_v51 }
 0x1e9   :  { %v591_v16 = vmax.f32 %v535_v14, 0.0  ;;  %v538_v17 = vadd.f32 %v1568_v15, %v2187_v61  ;;  %1671 = vmatprep.subr.bf16.mxu0 %v1850_v52 }
 0x1eb   :  { %608 = vst [vmem:[#allocation2 + $0x90] sm:$0xff] %v591_v16  ;;  %v592_v18 = vmax.f32 %v538_v17, 0.0  ;;  %v1569_v19 = vpop.f32.mrb[8].mxu1 }
 0x1ec   :  { %v1570_v20 = vpop.f32.mrb[9].mxu1  ;;  %1672 = vmatpush3.bf16.msra.mxu0 %v1851_v53 }
 0x1ed   :  { %609 = vst [vmem:[#allocation2 + $0x98] sm:$0xff] %v592_v18  ;;  %v1571_v22 = vadd.f32 %v1570_v20, %v1569_v19  ;;  %v1572_v23 = vpop.f32.mrb[10].mxu1  ;;  %v623_v24 = vpack.c.bf16 %v592_v18, %v591_v16  ;;  %1673 = vmatprep.subr.bf16.mxu0 %v1852_v54  ;;  %v1847_v18 = vld [vmem:[%s2324_s0 + $0xb8] sm:$0xff]  }
 0x1ee   :  { %v1573_v25 = vpop.f32.mrb[11].mxu1 }
 0x1ef   :  { %v543_v26 = vadd.f32 %v1571_v22, %v2187_v61  ;;  %v1574_v27 = vadd.f32 %v1573_v25, %v1572_v23  ;;  %873 = vmatmul.mubr.bf16.gmra.mrb[20].mxu0 %v623_v24 }
 0x1f0   :  { %880 = vmatprep.mubr.bf16.mxu0 %v1842_v21  ;;  %1674 = vmatpush3.bf16.msra.mxu0 %v1853_v55 }
 0x1f1   :  { %v593_v28 = vmax.f32 %v543_v26, 0.0  ;;  %v546_v29 = vadd.f32 %v1574_v27, %v2187_v61  ;;  %1675 = vmatprep.subr.bf16.mxu0 %v1854_v56 }
 0x1f3   :  { %610 = vst [vmem:[#allocation2 + $0xa0] sm:$0xff] %v593_v28  ;;  %v594_v30 = vmax.f32 %v546_v29, 0.0  ;;  %v1575_v31 = vpop.f32.mrb[12].mxu1  ;;  %v1858_v29 = vld [vmem:[%s2326_s2 + $0x168] sm:$0xff]  }
 0x1f4   :  { %v1576_v32 = vpop.f32.mrb[13].mxu1  ;;  %1676 = vmatpush3.bf16.msra.mxu0 %v1855_v57  ;;  %v1845_v57 = vld [vmem:[%s2324_s0 + $0xa8] sm:$0xff]   ;;  %1770 = vmatprep.subr.bf16.mxu1 %v1858_v29 }
 0x1f5   :  { %611 = vst [vmem:[#allocation2 + $0xa8] sm:$0xff] %v594_v30  ;;  %v1577_v34 = vadd.f32 %v1576_v32, %v1575_v31  ;;  %v1578_v35 = vpop.f32.mrb[14].mxu1  ;;  %v624_v36 = vpack.c.bf16 %v594_v30, %v593_v28  ;;  %1677 = vmatprep.subr.bf16.mxu0 %v2175_v58  ;;  %v1859_v30 = vld [vmem:[%s2326_s2 + $0x128] sm:$0xff]   ;;  %v1861_v31 = vld [vmem:[%s2326_s2 + $0x130] sm:$0xff]   ;;  %v1862_v32 = vld [vmem:[%s2326_s2 + $0x178] sm:$0xff]  }
 0x1f6   :  { %v1579_v37 = vpop.f32.mrb[15].mxu1  ;;  %1778 = vmatpush3.bf16.msra.mxu1 %v1859_v30 }
 0x1f7   :  { %v551_v38 = vadd.f32 %v1577_v34, %v2187_v61  ;;  %v1580_v39 = vadd.f32 %v1579_v37, %v1578_v35  ;;  %881 = vmatmul.mubr.bf16.gmra.mrb[24].mxu0 %v624_v36  ;;  %v1864_v34 = vld [vmem:[%s2324_s0 + $0xc0] sm:$0xff]   ;;  %v1866_v35 = vld [vmem:[%s2324_s0 + $0xd0] sm:$0xff]  }
 0x1f8   :  { %888 = vmatprep.mubr.bf16.mxu0 %v1843_v33  ;;  %1678 = vmatpush3.bf16.msra.mxu0 %v2181_v59  ;;  %v1863_v33 = vld [vmem:[%s2326_s2 + $0x138] sm:$0xff]   ;;  %v2255_v37 = vld [vmem:[%s2327_s3 + $0x2] ss:$0 sm:$0xff] }
 0x1f9   :  { %v595_v40 = vmax.f32 %v551_v38, 0.0  ;;  %v554_v41 = vadd.f32 %v1580_v39, %v2187_v61  ;;  %1679 = vmatprep.subr.bf16.mxu0 %v1858_v29  ;;  %1220 = vmatprep.mubr.bf16.mxu1 %v1866_v35 }
 0x1fb   :  { %612 = vst [vmem:[#allocation2 + $0xb0] sm:$0xff] %v595_v40  ;;  %v596_v42 = vmax.f32 %v554_v41, 0.0  ;;  %v1581_v43 = vpop.f32.mrb[16].mxu1 }
 0x1fc   :  { %v1582_v44 = vpop.f32.mrb[17].mxu1  ;;  %1680 = vmatpush3.bf16.msra.mxu0 %v1859_v30 }
 0x1fd   :  { %613 = vst [vmem:[#allocation2 + $0xb8] sm:$0xff] %v596_v42  ;;  %v1583_v46 = vadd.f32 %v1582_v44, %v1581_v43  ;;  %v1584_v47 = vpop.f32.mrb[18].mxu1  ;;  %v625_v48 = vpack.c.bf16 %v596_v42, %v595_v40 }
 0x1fe   :  { %v1585_v49 = vpop.f32.mrb[19].mxu1 }
 0x1ff   :  { %v559_v50 = vadd.f32 %v1583_v46, %v2187_v61  ;;  %v1586_v51 = vadd.f32 %v1585_v49, %v1584_v47  ;;  %889 = vmatmul.mubr.bf16.gmra.mrb[28].mxu0 %v625_v48  ;;  %v1865_v49 = vld [vmem:[%s2324_s0 + $0xc8] sm:$0xff]  }
 0x200   :  { %896 = vmatprep.mubr.bf16.mxu0 %v1844_v45 }
 0x201   :  { %v597_v52 = vmax.f32 %v559_v50, 0.0  ;;  %v562_v53 = vadd.f32 %v1586_v51, %v2187_v61 }
 0x203   :  { %614 = vst [vmem:[#allocation2 + $0xc0] sm:$0xff] %v597_v52  ;;  %v598_v54 = vmax.f32 %v562_v53, 0.0  ;;  %v1587_v55 = vpop.f32.mrb[20].mxu1 }
 0x204   :  { %v1588_v56 = vpop.f32.mrb[21].mxu1 }
 0x205   :  { %615 = vst [vmem:[#allocation2 + $0xc8] sm:$0xff] %v598_v54  ;;  %v1589_v58 = vadd.f32 %v1588_v56, %v1587_v55  ;;  %v1590_v59 = vpop.f32.mrb[22].mxu1  ;;  %v626_v60 = vpack.c.bf16 %v598_v54, %v597_v52 }
 0x206   :  { %v1591_v62 = vpop.f32.mrb[23].mxu1 }
 0x207   :  { %v567_v63 = vadd.f32 %v1589_v58, %v2187_v61  ;;  %v1592_v0 = vadd.f32 %v1591_v62, %v1590_v59  ;;  %897 = vmatmul.mubr.bf16.gmra.mrb[32].mxu0 %v626_v60 }
 0x208   :  { %904 = vmatprep.mubr.bf16.mxu0 %v1845_v57 }
 0x209   :  { %v599_v1 = vmax.f32 %v567_v63, 0.0  ;;  %v570_v2 = vadd.f32 %v1592_v0, %v2187_v61 }
 0x20b   :  { %616 = vst [vmem:[#allocation2 + $0xd0] sm:$0xff] %v599_v1  ;;  %v600_v3 = vmax.f32 %v570_v2, 0.0  ;;  %v1593_v4 = vpop.f32.mrb[24].mxu1 }
 0x20c   :  { %v1594_v5 = vpop.f32.mrb[25].mxu1 }
 0x20d   :  { %617 = vst [vmem:[#allocation2 + $0xd8] sm:$0xff] %v600_v3  ;;  %v1595_v7 = vadd.f32 %v1594_v5, %v1593_v4  ;;  %v1596_v8 = vpop.f32.mrb[26].mxu1  ;;  %v627_v9 = vpack.c.bf16 %v600_v3, %v599_v1 }
 0x20e   :  { %v1597_v10 = vpop.f32.mrb[27].mxu1 }
 0x20f   :  { %v575_v11 = vadd.f32 %v1595_v7, %v2187_v61  ;;  %v1598_v12 = vadd.f32 %v1597_v10, %v1596_v8  ;;  %905 = vmatmul.mubr.bf16.gmra.mrb[36].mxu0 %v627_v9  ;;  %v1867_v9 = vld [vmem:[%s2324_s0 + $0xd8] sm:$0xff]  }
 0x210   :  { %912 = vmatprep.mubr.bf16.mxu0 %v1846_v6 }
 0x211   :  { %v601_v13 = vmax.f32 %v575_v11, 0.0  ;;  %v578_v14 = vadd.f32 %v1598_v12, %v2187_v61 }
 0x213   :  { %618 = vst [vmem:[#allocation2 + $0xe0] sm:$0xff] %v601_v13  ;;  %v602_v15 = vmax.f32 %v578_v14, 0.0  ;;  %v1599_v16 = vpop.f32.mrb[28].mxu1 }
 0x214   :  { %v1600_v17 = vpop.f32.mrb[29].mxu1 }
 0x215   :  { %619 = vst [vmem:[#allocation2 + $0xe8] sm:$0xff] %v602_v15  ;;  %v1601_v19 = vadd.f32 %v1600_v17, %v1599_v16  ;;  %v1602_v20 = vpop.f32.mrb[30].mxu1  ;;  %v628_v21 = vpack.c.bf16 %v602_v15, %v601_v13 }
 0x216   :  { %v1603_v22 = vpop.f32.mrb[31].mxu1 }
 0x217   :  { %v583_v23 = vadd.f32 %v1601_v19, %v2187_v61  ;;  %v1604_v24 = vadd.f32 %v1603_v22, %v1602_v20  ;;  %913 = vmatmul.mubr.bf16.gmra.mrb[40].mxu0 %v628_v21  ;;  %v1868_v21 = vld [vmem:[%s2324_s0 + $0xe0] sm:$0xff]  }
 0x218   :  { %920 = vmatprep.mubr.bf16.mxu0 %v1847_v18 }
 0x219   :  { %v603_v25 = vmax.f32 %v583_v23, 0.0  ;;  %v586_v26 = vadd.f32 %v1604_v24, %v2187_v61  ;;  %v1860_v61 = vld [vmem:[%s2326_s2 + $0x170] sm:$0xff]  }
 0x21a   :  { %1681 = vmatprep.subr.bf16.mxu0 %v1860_v61  ;;  %1771 = vmatprep.subr.bf16.mxu1 %v1860_v61 }
 0x21b   :  { %620 = vst [vmem:[#allocation2 + $0xf0] sm:$0xff] %v603_v25  ;;  %v604_v27 = vmax.f32 %v586_v26, 0.0  ;;  %1682 = vmatpush3.bf16.msra.mxu0 %v1861_v31  ;;  %1779 = vmatpush3.bf16.msra.mxu1 %v1861_v31 }
 0x21c   :  { %1683 = vmatprep.subr.bf16.mxu0 %v1862_v32  ;;  %1772 = vmatprep.subr.bf16.mxu1 %v1862_v32  ;;  %v1869_v32 = vld [vmem:[%s2324_s0 + $0xe8] sm:$0xff]  }
 0x21d   :  { %621 = vst [vmem:[#allocation2 + $0xf8] sm:$0xff] %v604_v27  ;;  %v629_v28 = vpack.c.bf16 %v604_v27, %v603_v25 }
 0x21f   :  { %921 = vmatmul.mubr.bf16.gmra.mrb[44].mxu0 %v629_v28  ;;  %1780 = vmatpush3.bf16.msra.mxu1 %v1863_v33 }
 0x220   :  { %1684 = vmatpush3.bf16.msra.mxu0 %v1863_v33  ;;  %1204 = vmatprep.mubr.bf16.mxu0 %v1864_v34 }
 0x2ba   :  { %v1621_v36 = vpop.f32.mrb[16].mxu0 }
 0x2bb   :  { %v1622_v38 = vpop.f32.mrb[17].mxu0 }
 0x2bc   :  { %v1623_v39 = vadd.f32 %v1622_v38, %v1621_v36  ;;  %v1624_v40 = vpop.f32.mrb[18].mxu0 }
 0x2bd   :  { %v1625_v41 = vpop.f32.mrb[19].mxu0 }
 0x2be   :  { %v867_v42 = vadd.f32 %v1623_v39, %v2255_v37  ;;  %v1626_v43 = vadd.f32 %v1625_v41, %v1624_v40 }
 0x2c0   :  { %v929_v44 = vmax.f32 %v867_v42, 0.0  ;;  %v870_v45 = vadd.f32 %v1626_v43, %v2255_v37 }
 0x2c2   :  { %946 = vst [vmem:[#allocation2 + $0x100] sm:$0xff] %v929_v44  ;;  %v930_v46 = vmax.f32 %v870_v45, 0.0  ;;  %v1627_v47 = vpop.f32.mrb[20].mxu0  ;;  %v1870_v45 = vld [vmem:[%s2324_s0 + $0xf0] sm:$0xff]  }
 0x2c3   :  { %v1628_v48 = vpop.f32.mrb[21].mxu0 }
 0x2c4   :  { %947 = vst [vmem:[#allocation2 + $0x108] sm:$0xff] %v930_v46  ;;  %v962_v50 = vpack.c.bf16 %v930_v46, %v929_v44  ;;  %v1629_v51 = vadd.f32 %v1628_v48, %v1627_v47  ;;  %v1630_v52 = vpop.f32.mrb[22].mxu0 }
 0x2c5   :  { %v1631_v53 = vpop.f32.mrb[23].mxu0 }
 0x2c6   :  { %v875_v54 = vadd.f32 %v1629_v51, %v2255_v37  ;;  %v1632_v55 = vadd.f32 %v1631_v53, %v1630_v52  ;;  %1205 = vmatmul.mubr.bf16.vlgmr.msra.gmra.mrb[48].mxu0 %v962_v50 }
 0x2c7   :  { %1212 = vmatprep.mubr.bf16.mxu0 %v1865_v49 }
 0x2c8   :  { %v931_v56 = vmax.f32 %v875_v54, 0.0  ;;  %v878_v57 = vadd.f32 %v1632_v55, %v2255_v37 }
 0x2ca   :  { %948 = vst [vmem:[#allocation2 + $0x110] sm:$0xff] %v931_v56  ;;  %v932_v58 = vmax.f32 %v878_v57, 0.0  ;;  %v1633_v59 = vpop.f32.mrb[24].mxu0  ;;  %v1871_v57 = vld [vmem:[%s2324_s0 + $0xf8] sm:$0xff]  }
 0x2cb   :  { %v1634_v60 = vpop.f32.mrb[25].mxu0 }
 0x2cc   :  { %949 = vst [vmem:[#allocation2 + $0x118] sm:$0xff] %v932_v58  ;;  %v1635_v62 = vadd.f32 %v1634_v60, %v1633_v59  ;;  %v1636_v63 = vpop.f32.mrb[26].mxu0  ;;  %v963_v0 = vpack.c.bf16 %v932_v58, %v931_v56 }
 0x2cd   :  { %v1637_v1 = vpop.f32.mrb[27].mxu0 }
 0x2ce   :  { %v883_v2 = vadd.f32 %v1635_v62, %v2255_v37  ;;  %v1638_v3 = vadd.f32 %v1637_v1, %v1636_v63  ;;  %1213 = vmatmul.mubr.bf16.gmra.mrb[52].mxu0 %v963_v0 }
 0x2d0   :  { %v933_v4 = vmax.f32 %v883_v2, 0.0  ;;  %v886_v5 = vadd.f32 %v1638_v3, %v2255_v37 }
 0x2d2   :  { %950 = vst [vmem:[#allocation2 + $0x120] sm:$0xff] %v933_v4  ;;  %v934_v6 = vmax.f32 %v886_v5, 0.0  ;;  %v1639_v7 = vpop.f32.mrb[28].mxu0 }
 0x2d3   :  { %v1640_v8 = vpop.f32.mrb[29].mxu0 }
 0x2d4   :  { %951 = vst [vmem:[#allocation2 + $0x128] sm:$0xff] %v934_v6  ;;  %v964_v10 = vpack.c.bf16 %v934_v6, %v933_v4  ;;  %v1641_v11 = vadd.f32 %v1640_v8, %v1639_v7  ;;  %v1642_v12 = vpop.f32.mrb[30].mxu0  ;;  %v2294_v6 = vld [vmem:[%s2327_s3 + $0x3] ss:$0 sm:$0xff]  ;;  %s1928_s3 = smov [#allocation2]  }
 0x2d5   :  { %v1643_v13 = vpop.f32.mrb[31].mxu0  ;;  %s1307_s9 = sshll.u32 %s1928_s3, 4  ;;  %s1308_s9 = int_to_ptr.vmem [resolvable:$true] %s1307_s9 }
 0x2d6   :  { %v891_v14 = vadd.f32 %v1641_v11, %v2255_v37  ;;  %v1644_v15 = vadd.f32 %v1643_v13, %v1642_v12  ;;  %1221 = vmatmul.mubr.bf16.vlgmr.msra.gmra.mrb[32].mxu1 %v964_v10  ;;  %s1904_s10 = scalar_lea.vmem %s1308_s9, 8192  ;;  %p1909_p1 = scmp.lt.s32.totalorder %s1308_s9, %s1308_s9 }
 0x2d7   :  { %1228 = vmatprep.mubr.bf16.mxu1 %v1867_v9  ;;  %p1905_p0 = scmp.ne.s32.totalorder %s1308_s9, %s1904_s10  ;;  %p1910_p2 = scmp.lt.s32.totalorder %s1904_s10, %s1904_s10 }
 0x2d8   :  { %v935_v16 = vmax.f32 %v891_v14, 0.0  ;;  %v894_v17 = vadd.f32 %v1644_v15, %v2255_v37 }
 0x2d9   :  { %p1911_p3 = por %p1910_p2, %p1909_p1 }
 0x2da   :  { %952 = vst [vmem:[#allocation2 + $0x130] sm:$0xff] %v935_v16  ;;  %v936_v18 = vmax.f32 %v894_v17, 0.0  ;;  %v1645_v19 = vpop.f32.mrb[32].mxu0 }
 0x2db   :  { %v1646_v20 = vpop.f32.mrb[33].mxu0  ;;  %p1912_p4 = pnand %p1911_p3, %p1905_p0 }
 0x2dc   :  { %953 = vst [vmem:[#allocation2 + $0x138] sm:$0xff] %v936_v18  ;;  %v1647_v22 = vadd.f32 %v1646_v20, %v1645_v19  ;;  %v1648_v23 = vpop.f32.mrb[34].mxu0  ;;  %v965_v24 = vpack.c.bf16 %v936_v18, %v935_v16 }
 0x2dd   :  { %v1649_v25 = vpop.f32.mrb[35].mxu0 }
 0x2de   :  { %v899_v26 = vadd.f32 %v1647_v22, %v2255_v37  ;;  %v1650_v27 = vadd.f32 %v1649_v25, %v1648_v23  ;;  %1229 = vmatmul.mubr.bf16.gmra.mrb[36].mxu1 %v965_v24 }
 0x2df   :  { %1236 = vmatprep.mubr.bf16.mxu1 %v1868_v21 }
 0x2e0   :  { %v937_v28 = vmax.f32 %v899_v26, 0.0  ;;  %v902_v29 = vadd.f32 %v1650_v27, %v2255_v37 }
 0x2e2   :  { %954 = vst [vmem:[#allocation2 + $0x140] sm:$0xff] %v937_v28  ;;  %v938_v30 = vmax.f32 %v902_v29, 0.0  ;;  %v1651_v61 = vpop.f32.mrb[36].mxu0 }
 0x2e3   :  { %v1652_v31 = vpop.f32.mrb[37].mxu0 }
 0x2e4   :  { %955 = vst [vmem:[#allocation2 + $0x148] sm:$0xff] %v938_v30  ;;  %v1653_v33 = vadd.f32 %v1652_v31, %v1651_v61  ;;  %v1654_v34 = vpop.f32.mrb[38].mxu0  ;;  %v966_v35 = vpack.c.bf16 %v938_v30, %v937_v28 }
 0x2e5   :  { %v1655_v36 = vpop.f32.mrb[39].mxu0 }
 0x2e6   :  { %v907_v38 = vadd.f32 %v1653_v33, %v2255_v37  ;;  %v1656_v39 = vadd.f32 %v1655_v36, %v1654_v34  ;;  %1237 = vmatmul.mubr.bf16.gmra.mrb[40].mxu1 %v966_v35 }
 0x2e7   :  { %1244 = vmatprep.mubr.bf16.mxu1 %v1869_v32 }
 0x2e8   :  { %v939_v40 = vmax.f32 %v907_v38, 0.0  ;;  %v910_v41 = vadd.f32 %v1656_v39, %v2255_v37 }
 0x2ea   :  { %956 = vst [vmem:[#allocation2 + $0x150] sm:$0xff] %v939_v40  ;;  %v940_v42 = vmax.f32 %v910_v41, 0.0  ;;  %v1657_v43 = vpop.f32.mrb[40].mxu0 }
 0x2eb   :  { %v1658_v44 = vpop.f32.mrb[41].mxu0 }
 0x2ec   :  { %957 = vst [vmem:[#allocation2 + $0x158] sm:$0xff] %v940_v42  ;;  %v1659_v46 = vadd.f32 %v1658_v44, %v1657_v43  ;;  %v1660_v47 = vpop.f32.mrb[42].mxu0  ;;  %v967_v48 = vpack.c.bf16 %v940_v42, %v939_v40 }
 0x2ed   :  { %v1661_v49 = vpop.f32.mrb[43].mxu0 }
 0x2ee   :  { %v915_v50 = vadd.f32 %v1659_v46, %v2255_v37  ;;  %v1662_v51 = vadd.f32 %v1661_v49, %v1660_v47  ;;  %1245 = vmatmul.mubr.bf16.gmra.mrb[44].mxu1 %v967_v48 }
 0x2ef   :  { %1252 = vmatprep.mubr.bf16.mxu1 %v1870_v45 }
 0x2f0   :  { %v941_v52 = vmax.f32 %v915_v50, 0.0  ;;  %v918_v53 = vadd.f32 %v1662_v51, %v2255_v37 }
 0x2f2   :  { %958 = vst [vmem:[#allocation2 + $0x160] sm:$0xff] %v941_v52  ;;  %v942_v54 = vmax.f32 %v918_v53, 0.0  ;;  %v1663_v55 = vpop.f32.mrb[44].mxu0 }
 0x2f3   :  { %v1664_v56 = vpop.f32.mrb[45].mxu0 }
 0x2f4   :  { %959 = vst [vmem:[#allocation2 + $0x168] sm:$0xff] %v942_v54  ;;  %v1665_v58 = vadd.f32 %v1664_v56, %v1663_v55  ;;  %v1666_v59 = vpop.f32.mrb[46].mxu0  ;;  %v968_v60 = vpack.c.bf16 %v942_v54, %v941_v52 }
 0x2f5   :  { %v1667_v62 = vpop.f32.mrb[47].mxu0 }
 0x2f6   :  { %v923_v63 = vadd.f32 %v1665_v58, %v2255_v37  ;;  %v1668_v0 = vadd.f32 %v1667_v62, %v1666_v59  ;;  %1253 = vmatmul.mubr.bf16.gmra.mrb[48].mxu1 %v968_v60 }
 0x2f7   :  { %1260 = vmatprep.mubr.bf16.mxu1 %v1871_v57 }
 0x2f8   :  { %v943_v1 = vmax.f32 %v923_v63, 0.0  ;;  %v926_v2 = vadd.f32 %v1668_v0, %v2255_v37 }
 0x2fa   :  { %960 = vst [vmem:[#allocation2 + $0x170] sm:$0xff] %v943_v1  ;;  %v944_v3 = vmax.f32 %v926_v2, 0.0 }
 0x2fc   :  { %961 = vst [vmem:[#allocation2 + $0x178] sm:$0xff] %v944_v3  ;;  %v969_v4 = vpack.c.bf16 %v944_v3, %v943_v1 }
 0x2fe   :  { %1261 = vmatmul.mubr.bf16.gmra.mrb[52].mxu1 %v969_v4 }
 0x399   :  { %v1685_v5 = vpop.f32.mrb[48].mxu0 }
 0x39a   :  { %v1686_v7 = vpop.f32.mrb[49].mxu0 }
 0x39b   :  { %v1687_v8 = vadd.f32 %v1686_v7, %v1685_v5  ;;  %v1688_v9 = vpop.f32.mrb[50].mxu0 }
 0x39c   :  { %v1689_v10 = vpop.f32.mrb[51].mxu0 }
 0x39d   :  { %v1207_v11 = vadd.f32 %v1687_v8, %v2294_v6  ;;  %v1690_v12 = vadd.f32 %v1689_v10, %v1688_v9 }
 0x39f   :  { %v1269_v13 = vmax.f32 %v1207_v11, 0.0  ;;  %v1210_v37 = vadd.f32 %v1690_v12, %v2294_v6 }
 0x3a1   :  { %1286 = vst [vmem:[#allocation2 + $0x180] sm:$0xff] %v1269_v13  ;;  %v1270_v14 = vmax.f32 %v1210_v37, 0.0  ;;  %v1691_v15 = vpop.f32.mrb[52].mxu0 }
 0x3a2   :  { %v1692_v16 = vpop.f32.mrb[53].mxu0 }
 0x3a3   :  { %1287 = vst [vmem:[#allocation2 + $0x188] sm:$0xff] %v1270_v14  ;;  %v1693_v17 = vadd.f32 %v1692_v16, %v1691_v15  ;;  %v1694_v18 = vpop.f32.mrb[54].mxu0 }
 0x3a4   :  { %v1695_v19 = vpop.f32.mrb[55].mxu0 }
 0x3a5   :  { %v1215_v20 = vadd.f32 %v1693_v17, %v2294_v6  ;;  %v1696_v21 = vadd.f32 %v1695_v19, %v1694_v18 }
 0x3a7   :  { %v1271_v22 = vmax.f32 %v1215_v20, 0.0  ;;  %v1218_v23 = vadd.f32 %v1696_v21, %v2294_v6 }
 0x3a9   :  { %1288 = vst [vmem:[#allocation2 + $0x190] sm:$0xff] %v1271_v22  ;;  %v1272_v24 = vmax.f32 %v1218_v23, 0.0  ;;  %v1697_v25 = vpop.f32.mrb[32].mxu1 }
 0x3aa   :  { %v1698_v26 = vpop.f32.mrb[33].mxu1 }
 0x3ab   :  { %1289 = vst [vmem:[#allocation2 + $0x198] sm:$0xff] %v1272_v24  ;;  %v1699_v27 = vadd.f32 %v1698_v26, %v1697_v25  ;;  %v1700_v28 = vpop.f32.mrb[34].mxu1 }
 0x3ac   :  { %v1701_v29 = vpop.f32.mrb[35].mxu1 }
 0x3ad   :  { %v1223_v30 = vadd.f32 %v1699_v27, %v2294_v6  ;;  %v1702_v61 = vadd.f32 %v1701_v29, %v1700_v28 }
 0x3af   :  { %v1273_v31 = vmax.f32 %v1223_v30, 0.0  ;;  %v1226_v32 = vadd.f32 %v1702_v61, %v2294_v6 }
 0x3b1   :  { %1290 = vst [vmem:[#allocation2 + $0x1a0] sm:$0xff] %v1273_v31  ;;  %v1274_v33 = vmax.f32 %v1226_v32, 0.0  ;;  %v1703_v34 = vpop.f32.mrb[36].mxu1 }
 0x3b2   :  { %v1704_v35 = vpop.f32.mrb[37].mxu1 }
 0x3b3   :  { %1291 = vst [vmem:[#allocation2 + $0x1a8] sm:$0xff] %v1274_v33  ;;  %v1705_v36 = vadd.f32 %v1704_v35, %v1703_v34  ;;  %v1706_v38 = vpop.f32.mrb[38].mxu1 }
 0x3b4   :  { %v1707_v39 = vpop.f32.mrb[39].mxu1 }
 0x3b5   :  { %v1231_v40 = vadd.f32 %v1705_v36, %v2294_v6  ;;  %v1708_v41 = vadd.f32 %v1707_v39, %v1706_v38 }
 0x3b7   :  { %v1275_v42 = vmax.f32 %v1231_v40, 0.0  ;;  %v1234_v43 = vadd.f32 %v1708_v41, %v2294_v6 }
 0x3b9   :  { %1292 = vst [vmem:[#allocation2 + $0x1b0] sm:$0xff] %v1275_v42  ;;  %v1276_v44 = vmax.f32 %v1234_v43, 0.0  ;;  %v1709_v45 = vpop.f32.mrb[40].mxu1 }
 0x3ba   :  { %v1710_v46 = vpop.f32.mrb[41].mxu1 }
 0x3bb   :  { %1293 = vst [vmem:[#allocation2 + $0x1b8] sm:$0xff] %v1276_v44  ;;  %v1711_v47 = vadd.f32 %v1710_v46, %v1709_v45  ;;  %v1712_v48 = vpop.f32.mrb[42].mxu1 }
 0x3bc   :  { %v1713_v49 = vpop.f32.mrb[43].mxu1 }
 0x3bd   :  { %v1239_v50 = vadd.f32 %v1711_v47, %v2294_v6  ;;  %v1714_v51 = vadd.f32 %v1713_v49, %v1712_v48 }
 0x3bf   :  { %v1277_v52 = vmax.f32 %v1239_v50, 0.0  ;;  %v1242_v53 = vadd.f32 %v1714_v51, %v2294_v6 }
 0x3c1   :  { %1294 = vst [vmem:[#allocation2 + $0x1c0] sm:$0xff] %v1277_v52  ;;  %v1278_v54 = vmax.f32 %v1242_v53, 0.0  ;;  %v1715_v55 = vpop.f32.mrb[44].mxu1 }
 0x3c2   :  { %v1716_v56 = vpop.f32.mrb[45].mxu1 }
 0x3c3   :  { %1295 = vst [vmem:[#allocation2 + $0x1c8] sm:$0xff] %v1278_v54  ;;  %v1717_v57 = vadd.f32 %v1716_v56, %v1715_v55  ;;  %v1718_v58 = vpop.f32.mrb[46].mxu1 }
 0x3c4   :  { %v1719_v59 = vpop.f32.mrb[47].mxu1 }
 0x3c5   :  { %v1247_v60 = vadd.f32 %v1717_v57, %v2294_v6  ;;  %v1720_v62 = vadd.f32 %v1719_v59, %v1718_v58 }
 0x3c7   :  { %v1279_v63 = vmax.f32 %v1247_v60, 0.0  ;;  %v1250_v0 = vadd.f32 %v1720_v62, %v2294_v6 }
 0x3c9   :  { %1296 = vst [vmem:[#allocation2 + $0x1d0] sm:$0xff] %v1279_v63  ;;  %v1280_v1 = vmax.f32 %v1250_v0, 0.0  ;;  %v1721_v2 = vpop.f32.mrb[48].mxu1 }
 0x3ca   :  { %v1722_v3 = vpop.f32.mrb[49].mxu1 }
 0x3cb   :  { %1297 = vst [vmem:[#allocation2 + $0x1d8] sm:$0xff] %v1280_v1  ;;  %v1723_v4 = vadd.f32 %v1722_v3, %v1721_v2  ;;  %v1724_v5 = vpop.f32.mrb[50].mxu1 }
 0x3cc   :  { %v1725_v7 = vpop.f32.mrb[51].mxu1 }
 0x3cd   :  { %v1255_v8 = vadd.f32 %v1723_v4, %v2294_v6  ;;  %v1726_v9 = vadd.f32 %v1725_v7, %v1724_v5 }
 0x3cf   :  { %v1281_v10 = vmax.f32 %v1255_v8, 0.0  ;;  %v1258_v11 = vadd.f32 %v1726_v9, %v2294_v6 }
 0x3d1   :  { %1298 = vst [vmem:[#allocation2 + $0x1e0] sm:$0xff] %v1281_v10  ;;  %v1282_v12 = vmax.f32 %v1258_v11, 0.0  ;;  %v1727_v13 = vpop.f32.mrb[52].mxu1 }
 0x3d2   :  { %v1728_v37 = vpop.f32.mrb[53].mxu1 }
 0x3d3   :  { %1299 = vst [vmem:[#allocation2 + $0x1e8] sm:$0xff] %v1282_v12  ;;  %v1729_v14 = vadd.f32 %v1728_v37, %v1727_v13  ;;  %v1730_v15 = vpop.f32.mrb[54].mxu1 }
 0x3d4   :  { %v1731_v16 = vpop.f32.mrb[55].mxu1 }
 0x3d5   :  { %v1263_v17 = vadd.f32 %v1729_v14, %v2294_v6  ;;  %v1732_v18 = vadd.f32 %v1731_v16, %v1730_v15 }
 0x3d7   :  { %v1283_v19 = vmax.f32 %v1263_v17, 0.0  ;;  %v1266_v20 = vadd.f32 %v1732_v18, %v2294_v6 }
 0x3d9   :  { %1300 = vst [vmem:[#allocation2 + $0x1f0] sm:$0xff] %v1283_v19  ;;  %v1284_v21 = vmax.f32 %v1266_v20, 0.0 }
 0x3db   :  { %1301 = vst [vmem:[#allocation2 + $0x1f8] sm:$0xff] %v1284_v21 }
 0x3dc   :  { %1915 = shalt.err (!%p1912_p4)
}
 0x3dd   :  { %s1916_s13 = scalar_lea.hbm %s2328_s4, 8192 }
 0x3de   :  { %p1917_p5 = scmp.ne.s32.totalorder %s2328_s4, %s1916_s13  ;;  %p1920_p6 = scmp.lt.u32.totalorder %s1916_s13, %s2328_s4 }
 0x3e0   :  { %p1922_p7 = pnand %p1920_p6, %p1917_p5 }
 0x3e2   :  { %1925 = shalt.err (!%p1922_p7)
}
 0x3e3   :  { %s1929_s18 = smov 128   ;;  %s1930_s19 = smov 8  }
 0x3e4   :  { %1313 = dma.vmem_to_hbm [thread:$0]  %s1308_s9, 8192, %s2328_s4, [#allocation3], %s1929_s18, %s1929_s18, %s1930_s19  }
 0x3e5   :  { %1926 = dma.done.wait [#allocation3], 8192  }
 0x3e6   :  { %1927 = vsyncadd [#allocation3], 4294959104 }
 0x3e7   :  { %1317 = vsyncpa [#allocation3], 1 }

</bundles_post_ra>
